<compile_context>
chip_gen: v5e
topology: v5e:2x2
jax: 0.10.0
libtpu: 0.0.40
codegen_flags: <defaults>
</compile_context>

<pallas_src>
import jax
import jax.numpy as jnp
from jax.experimental import pallas as pl
from jax.experimental.pallas import tpu as pltpu

INPUT_SIZE = 784
HIDDEN = 50
NUM_CLASSES = 10

# Lane-dense padded dims (multiples of 128).
K_PAD = 896      # 7 * 128  (784 padded)
H_PAD = 128      # hidden 50 padded
C_PAD = 128      # classes 10 padded

MAX_TB = 512     # batch tile; 2 bufs * (512 x 896) bf16 ~ 1.8 MiB -> safe on v7x


def _round_up(n, m):
    return ((n + m - 1) // m) * m


def mlp_kernel(x_ref, w1_ref, b1_ref, w2_ref, b2_ref, o_ref):
    # First matmul on bf16 operands with f32 accumulation (MXU).
    h = jnp.dot(x_ref[...], w1_ref[...],
                preferred_element_type=jnp.float32)     # (TB, 128)
    # Bias + ReLU in f32 on the VPU (padded lanes stay exactly 0).
    h = jnp.maximum(h + b1_ref[...], 0.0)
    # Second (tiny) matmul kept in f32 for accuracy.
    y = jnp.dot(h, w2_ref[...],
                preferred_element_type=jnp.float32)     # (TB, 128)
    o_ref[...] = (y + b2_ref[...]).astype(o_ref.dtype)


@jax.jit
def neural_network_forward(x, w1, b1, w2, b2):
    """x: (B, 784) float32; weights stored (in, out). Returns (B, 10) f32."""
    B = x.shape[0]
    TB = min(MAX_TB, _round_up(B, 8))
    B_pad = _round_up(B, TB)
    grid = (B_pad // TB,)

    # Zero-pad everything to lane-dense shapes (exact: padded lanes contribute 0).
    x_p = jnp.zeros((B_pad, K_PAD), jnp.bfloat16)
    x_p = x_p.at[:B, :INPUT_SIZE].set(x.astype(jnp.bfloat16))
    w1_p = jnp.zeros((K_PAD, H_PAD), jnp.bfloat16)
    w1_p = w1_p.at[:INPUT_SIZE, :HIDDEN].set(w1.astype(jnp.bfloat16))
    b1_p = jnp.zeros((1, H_PAD), jnp.float32).at[:, :HIDDEN].set(b1)
    w2_p = jnp.zeros((H_PAD, C_PAD), jnp.float32)
    w2_p = w2_p.at[:HIDDEN, :NUM_CLASSES].set(w2)
    b2_p = jnp.zeros((1, C_PAD), jnp.float32).at[:, :NUM_CLASSES].set(b2)

    cost = pl.CostEstimate(
        flops=2 * B_pad * K_PAD * H_PAD + 2 * B_pad * H_PAD * C_PAD,
        transcendentals=0,
        bytes_accessed=(B_pad * K_PAD * 2            # x (bf16)
                        + K_PAD * H_PAD * 2          # w1 (bf16)
                        + (H_PAD + H_PAD * C_PAD + C_PAD) * 4
                        + B_pad * C_PAD * 4),        # out (f32)
    )

    out_full = pl.pallas_call(
        mlp_kernel,
        out_shape=jax.ShapeDtypeStruct((B_pad, C_PAD), jnp.float32),
        grid=grid,
        in_specs=[
            pl.BlockSpec((TB, K_PAD), lambda i: (i, 0)),   # x: batch-tiled
            pl.BlockSpec((K_PAD, H_PAD), lambda i: (0, 0)),  # w1: resident
            pl.BlockSpec((1, H_PAD), lambda i: (0, 0)),      # b1: resident
            pl.BlockSpec((H_PAD, C_PAD), lambda i: (0, 0)),  # w2: resident
            pl.BlockSpec((1, C_PAD), lambda i: (0, 0)),      # b2: resident
        ],
        out_specs=pl.BlockSpec((TB, C_PAD), lambda i: (i, 0)),
        compiler_params=pltpu.CompilerParams(
            dimension_semantics=("parallel",),
        ),
        cost_estimate=cost,
    )(x_p, w1_p, b1_p, w2_p, b2_p)

    return out_full[:B, :NUM_CLASSES]


def init_params(key):
    """Deterministic init mimicking PyTorch Linear (uniform +/- 1/sqrt(fan_in)),
    with weights stored as (in_features, out_features)."""
    k1, k2, k3, k4 = jax.random.split(key, 4)
    bound1 = 1.0 / (INPUT_SIZE ** 0.5)
    bound2 = 1.0 / (HIDDEN ** 0.5)
    w1 = jax.random.uniform(k1, (INPUT_SIZE, HIDDEN), jnp.float32,
                            -bound1, bound1)
    b1 = jax.random.uniform(k2, (1, HIDDEN), jnp.float32, -bound1, bound1)
    w2 = jax.random.uniform(k3, (HIDDEN, NUM_CLASSES), jnp.float32,
                            -bound2, bound2)
    b2 = jax.random.uniform(k4, (1, NUM_CLASSES), jnp.float32,
                            -bound2, bound2)
    return w1, b1, w2, b2


if __name__ == "__main__":
    key = jax.random.PRNGKey(0)
    k_x, k_p = jax.random.split(key)

    batch = 8
    x = jax.random.normal(k_x, (batch, INPUT_SIZE), jnp.float32)
    w1, b1, w2, b2 = init_params(k_p)

    out = neural_network_forward(x, w1, b1, w2, b2)
    out = jax.block_until_ready(out)

    # Reference checks.
    ref_f32 = jnp.maximum(x @ w1 + b1, 0.0) @ w2 + b2
    ref_bf16 = (jnp.maximum(
        jnp.dot(x.astype(jnp.bfloat16), w1.astype(jnp.bfloat16),
                preferred_element_type=jnp.float32) + b1, 0.0) @ w2 + b2)

    assert out.shape == (batch, NUM_CLASSES)
    # bf16-matched reference: should agree tightly.
    assert jnp.allclose(out, ref_bf16, atol=1e-4, rtol=1e-4), \
        float(jnp.max(jnp.abs(out - ref_bf16)))
    # full-precision reference: loose tolerance for the bf16 first matmul.
    assert jnp.allclose(out, ref_f32, atol=2e-2, rtol=2e-2), \
        float(jnp.max(jnp.abs(out - ref_f32)))

    print("KERNEL_OK")
</pallas_src>

<mosaic_0001>
module attributes {stable_mosaic.version = 11 : i64} {
  func.func @mlp_kernel(%arg0: i32, %arg1: memref<8x896xbf16, #tpu.memory_space<vmem>>, %arg2: memref<896x128xbf16, #tpu.memory_space<vmem>>, %arg3: memref<1x128xf32, #tpu.memory_space<vmem>>, %arg4: memref<128x128xf32, #tpu.memory_space<vmem>>, %arg5: memref<1x128xf32, #tpu.memory_space<vmem>>, %arg6: memref<8x128xf32, #tpu.memory_space<vmem>>) attributes {dimension_semantics = [#tpu.dimension_semantics<parallel>], iteration_bounds = array<i64: 1>, scalar_prefetch = 0 : i64, scratch_operands = 0 : i64, tpu.core_type = #tpu.core_type<tc>, window_params = [{transform_indices = @transform_0, window_bounds = array<i64: 8, 896>}, {pipeline_mode = #tpu.pipeline_mode<synchronous>, transform_indices = @transform_1, window_bounds = array<i64: 896, 128>}, {pipeline_mode = #tpu.pipeline_mode<synchronous>, transform_indices = @transform_2, window_bounds = array<i64: 1, 128>}, {pipeline_mode = #tpu.pipeline_mode<synchronous>, transform_indices = @transform_3, window_bounds = array<i64: 128, 128>}, {pipeline_mode = #tpu.pipeline_mode<synchronous>, transform_indices = @transform_4, window_bounds = array<i64: 1, 128>}, {transform_indices = @transform_5, window_bounds = array<i64: 8, 128>}]} {
    %c0 = arith.constant 0 : index
    %c0_0 = arith.constant 0 : index
    %0 = vector.load %arg1[%c0, %c0_0] : memref<8x896xbf16, #tpu.memory_space<vmem>>, vector<8x896xbf16>
    %c0_1 = arith.constant 0 : index
    %c0_2 = arith.constant 0 : index
    %1 = vector.load %arg2[%c0_1, %c0_2] : memref<896x128xbf16, #tpu.memory_space<vmem>>, vector<896x128xbf16>
    %cst = arith.constant dense<0.000000e+00> : vector<8x128xf32>
    %2 = tpu.matmul %0, %1, %cst {dimension_numbers = #tpu.dot_dimension_numbers<[1], [0], [0], [1], [0, 0, 1, 1], [], []>} : vector<8x896xbf16>, vector<896x128xbf16>, vector<8x128xf32> -> vector<8x128xf32>
    %c0_3 = arith.constant 0 : index
    %c0_4 = arith.constant 0 : index
    %3 = vector.load %arg3[%c0_3, %c0_4] : memref<1x128xf32, #tpu.memory_space<vmem>>, vector<1x128xf32>
    %4 = vector.broadcast %3 : vector<1x128xf32> to vector<8x128xf32>
    %5 = arith.addf %2, %4 : vector<8x128xf32>
    %cst_5 = arith.constant 0.000000e+00 : f32
    %6 = vector.broadcast %cst_5 : f32 to vector<8x128xf32>
    %7 = arith.maximumf %5, %6 : vector<8x128xf32>
    %c0_6 = arith.constant 0 : index
    %c0_7 = arith.constant 0 : index
    %8 = vector.load %arg4[%c0_6, %c0_7] : memref<128x128xf32, #tpu.memory_space<vmem>>, vector<128x128xf32>
    %cst_8 = arith.constant dense<0.000000e+00> : vector<8x128xf32>
    %9 = tpu.matmul %7, %8, %cst_8 {dimension_numbers = #tpu.dot_dimension_numbers<[1], [0], [0], [1], [0, 0, 1, 1], [], []>} : vector<8x128xf32>, vector<128x128xf32>, vector<8x128xf32> -> vector<8x128xf32>
    %c0_9 = arith.constant 0 : index
    %c0_10 = arith.constant 0 : index
    %10 = vector.load %arg5[%c0_9, %c0_10] : memref<1x128xf32, #tpu.memory_space<vmem>>, vector<1x128xf32>
    %11 = vector.broadcast %10 : vector<1x128xf32> to vector<8x128xf32>
    %12 = arith.addf %9, %11 : vector<8x128xf32>
    %c0_11 = arith.constant 0 : index
    %c0_12 = arith.constant 0 : index
    %13 = vector.load %arg6[%c0_11, %c0_12] : memref<8x128xf32, #tpu.memory_space<vmem>>, vector<8x128xf32>
    tpu.vector_store %arg6[%c0_11, %c0_12], %12 {strides = array<i32>} : memref<8x128xf32, #tpu.memory_space<vmem>>, vector<8x128xf32>,
    return
  }
  func.func @transform_0(%arg0: i32) -> (i32, i32) {
    %c0_i32 = arith.constant 0 : i32
    %c0_i32_0 = arith.constant 0 : i32
    return %arg0, %c0_i32 : i32, i32
  }
  func.func @transform_1(%arg0: i32) -> (i32, i32) {
    %c0_i32 = arith.constant 0 : i32
    %c0_i32_0 = arith.constant 0 : i32
    %c0_i32_1 = arith.constant 0 : i32
    return %c0_i32, %c0_i32_0 : i32, i32
  }
  func.func @transform_2(%arg0: i32) -> (i32, i32) {
    %c0_i32 = arith.constant 0 : i32
    %c0_i32_0 = arith.constant 0 : i32
    %c0_i32_1 = arith.constant 0 : i32
    return %c0_i32, %c0_i32_0 : i32, i32
  }
  func.func @transform_3(%arg0: i32) -> (i32, i32) {
    %c0_i32 = arith.constant 0 : i32
    %c0_i32_0 = arith.constant 0 : i32
    %c0_i32_1 = arith.constant 0 : i32
    return %c0_i32, %c0_i32_0 : i32, i32
  }
  func.func @transform_4(%arg0: i32) -> (i32, i32) {
    %c0_i32 = arith.constant 0 : i32
    %c0_i32_0 = arith.constant 0 : i32
    %c0_i32_1 = arith.constant 0 : i32
    return %c0_i32, %c0_i32_0 : i32, i32
  }
  func.func @transform_5(%arg0: i32) -> (i32, i32) {
    %c0_i32 = arith.constant 0 : i32
    %c0_i32_0 = arith.constant 0 : i32
    return %arg0, %c0_i32 : i32, i32
  }
}

</mosaic_0001>

<bundles_post_ra>
// kernel: neural_network_forward.1
= control target key start
LH: loop header
LB: loop body
LE: loop exit
PB: predicated region body
PF: predicated region fallthrough
CT: control target
= control target key end

     0   :  { %s1228_s0 = inlined_call_operand.vmem [shape: bf16[8,896], index: 0, kind: input, shape index: {}]   ;;  %s1229_s1 = inlined_call_operand.vmem [shape: bf16[896,128], index: 1, kind: input, shape index: {}]   ;;  %s1230_s2 = inlined_call_operand.vmem [shape: f32[1,128], index: 2, kind: input, shape index: {}]   ;;  %s1231_s3 = inlined_call_operand.vmem [shape: f32[128,128], index: 3, kind: input, shape index: {}]   ;;  %s1232_s4 = inlined_call_operand.vmem [shape: f32[1,128], index: 4, kind: input, shape index: {}]   ;;  %s1233_s5 = inlined_call_operand.hbm [shape: f32[8,128], index: 5, kind: output, shape index: {}]  }
   0x1   :  { %v882_v0 = vld [vmem:[%s1229_s1 + $0x38] sm:$0xff]  ;;  %v881_v3 = vld [vmem:[%s1229_s1 + $0x30] sm:$0xff]  ;;  %v880_v7 = vld [vmem:[%s1229_s1 + $0x28] sm:$0xff] }
   0x2   :  { %v890_v1 = vld [vmem:[%s1229_s1 + $0x78] sm:$0xff]  ;;  %502 = vmatpush.bf16.msra.mxu0 %v882_v0  ;;  %v889_v4 = vld [vmem:[%s1229_s1 + $0x70] sm:$0xff]  ;;  %v888_v8 = vld [vmem:[%s1229_s1 + $0x68] sm:$0xff] }
   0x3   :  { %v898_v2 = vld [vmem:[%s1229_s1 + $0xb8] sm:$0xff]  ;;  %515 = vmatpush.bf16.msra.mxu1 %v890_v1  ;;  %v897_v5 = vld [vmem:[%s1229_s1 + $0xb0] sm:$0xff]  ;;  %v896_v9 = vld [vmem:[%s1229_s1 + $0xa8] sm:$0xff] }
   0x4   :  { %528 = vmatpush.bf16.msra.mxu2 %v898_v2  ;;  %v906_v6 = vld [vmem:[%s1229_s1 + $0xf8] sm:$0xff]  ;;  %v905_v10 = vld [vmem:[%s1229_s1 + $0xf0] sm:$0xff]  ;;  %v879_v11 = vld [vmem:[%s1229_s1 + $0x20] sm:$0xff] }
   0x5   :  { %541 = vmatpush.bf16.msra.mxu3 %v906_v6  ;;  %v887_v12 = vld [vmem:[%s1229_s1 + $0x60] sm:$0xff]  ;;  %v904_v14 = vld [vmem:[%s1229_s1 + $0xe8] sm:$0xff]  ;;  %v878_v15 = vld [vmem:[%s1229_s1 + $0x18] sm:$0xff] }
   0x6   :  { %503 = vmatpush.bf16.msra.mxu0 %v881_v3  ;;  %v895_v13 = vld [vmem:[%s1229_s1 + $0xa0] sm:$0xff]  ;;  %v886_v16 = vld [vmem:[%s1229_s1 + $0x58] sm:$0xff] }
   0x7   :  { %516 = vmatpush.bf16.msra.mxu1 %v889_v4  ;;  %v894_v17 = vld [vmem:[%s1229_s1 + $0x98] sm:$0xff]  ;;  %v903_v18 = vld [vmem:[%s1229_s1 + $0xe0] sm:$0xff] }
   0x8   :  { %529 = vmatpush.bf16.msra.mxu2 %v897_v5 }
   0x9   :  { %542 = vmatpush.bf16.msra.mxu3 %v905_v10 }
   0xa   :  { %504 = vmatpush.bf16.msra.mxu0 %v880_v7 }
   0xb   :  { %517 = vmatpush.bf16.msra.mxu1 %v888_v8 }
   0xc   :  { %530 = vmatpush.bf16.msra.mxu2 %v896_v9 }
   0xd   :  { %543 = vmatpush.bf16.msra.mxu3 %v904_v14 }
   0xe   :  { %505 = vmatpush.bf16.msra.mxu0 %v879_v11 }
   0xf   :  { %518 = vmatpush.bf16.msra.mxu1 %v887_v12 }
  0x10   :  { %531 = vmatpush.bf16.msra.mxu2 %v895_v13 }
  0x11   :  { %10 = vsyncpa [#allocation3], 0  ;;  %v877_v19 = vld [vmem:[%s1229_s1 + $0x10] sm:$0xff]  ;;  %544 = vmatpush.bf16.msra.mxu3 %v903_v18  ;;  %v902_v22 = vld [vmem:[%s1229_s1 + $0xd8] sm:$0xff]  ;;  %s960_s18 = smov [#allocation2]   ;;  %s642_s22 = sshll.u32 %s1233_s5, 4  ;;  %s643_s22 = int_to_ptr.hbm [resolvable:$true] %s642_s22 }
  0x12   :  { %506 = vmatpush.bf16.msra.mxu0 %v878_v15  ;;  %v885_v20 = vld [vmem:[%s1229_s1 + $0x50] sm:$0xff]  ;;  %v876_v23 = vld [vmem:[%s1229_s1 + $0x8] sm:$0xff]  ;;  %v21_v25 = vld [vmem:[%s1228_s0] sm:$0xff]  ;;  %s640_s19 = sshll.u32 %s960_s18, 4  ;;  %s641_s19 = int_to_ptr.vmem [resolvable:$true] %s640_s19 }
  0x13   :  { %519 = vmatpush.bf16.msra.mxu1 %v886_v16  ;;  %v893_v21 = vld [vmem:[%s1229_s1 + $0x90] sm:$0xff]  ;;  %v884_v24 = vld [vmem:[%s1229_s1 + $0x48] sm:$0xff]  ;;  %v145_v29 = vunpack.c.l.b16 %v21_v25  ;;  %v875_v30 = vld [vmem:[%s1229_s1] sm:$0xff]  ;;  %v146_v33 = vunpack.c.h.b16 %v21_v25 }
  0x14   :  { %532 = vmatpush.bf16.msra.mxu2 %v894_v17  ;;  %v892_v26 = vld [vmem:[%s1229_s1 + $0x88] sm:$0xff]  ;;  %v901_v27 = vld [vmem:[%s1229_s1 + $0xd0] sm:$0xff]  ;;  %v883_v31 = vld [vmem:[%s1229_s1 + $0x40] sm:$0xff] }
  0x15   :  { %545 = vmatpush.bf16.msra.mxu3 %v902_v22  ;;  %v22_v28 = vld [vmem:[%s1228_s0 + $0x8] sm:$0xff]  ;;  %v891_v34 = vld [vmem:[%s1229_s1 + $0x80] sm:$0xff]  ;;  %v914_v35 = vld [vmem:[%s1229_s1 + $0x138] sm:$0xff]  ;;  %v152_v38 = vpack.c.b16 %v145_v29, %v145_v29  ;;  %v153_v41 = vpack.c.b16 %v146_v33, %v146_v33 }
  0x16   :  { %507 = vmatpush.bf16.msra.mxu0 %v877_v19  ;;  %v147_v32 = vunpack.c.l.b16 %v22_v28  ;;  %v922_v36 = vld [vmem:[%s1229_s1 + $0x178] sm:$0xff]  ;;  %v900_v39 = vld [vmem:[%s1229_s1 + $0xc8] sm:$0xff]  ;;  %v913_v42 = vld [vmem:[%s1229_s1 + $0x130] sm:$0xff]  ;;  %v148_v46 = vunpack.c.h.b16 %v22_v28 }
  0x17   :  { %520 = vmatpush.bf16.msra.mxu1 %v885_v20  ;;  %v930_v37 = vld [vmem:[%s1229_s1 + $0x1b8] sm:$0xff]  ;;  %v921_v43 = vld [vmem:[%s1229_s1 + $0x170] sm:$0xff]  ;;  %v899_v45 = vld [vmem:[%s1229_s1 + $0xc0] sm:$0xff] }
  0x18   :  { %533 = vmatpush.bf16.msra.mxu2 %v893_v21  ;;  %v154_v40 = vpack.c.b16 %v147_v32, %v147_v32  ;;  %v929_v44 = vld [vmem:[%s1229_s1 + $0x1b0] sm:$0xff]  ;;  %v912_v47 = vld [vmem:[%s1229_s1 + $0x128] sm:$0xff]  ;;  %v155_v50 = vpack.c.b16 %v148_v46, %v148_v46  ;;  %v911_v51 = vld [vmem:[%s1229_s1 + $0x120] sm:$0xff] }
  0x19   :  { %546 = vmatpush.bf16.msra.mxu3 %v901_v27  ;;  %v920_v48 = vld [vmem:[%s1229_s1 + $0x168] sm:$0xff]  ;;  %v919_v52 = vld [vmem:[%s1229_s1 + $0x160] sm:$0xff]  ;;  %v910_v54 = vld [vmem:[%s1229_s1 + $0x118] sm:$0xff] }
  0x1a   :  { %508 = vmatpush.bf16.msra.mxu0 %v876_v23  ;;  %v928_v49 = vld [vmem:[%s1229_s1 + $0x1a8] sm:$0xff]  ;;  %v927_v53 = vld [vmem:[%s1229_s1 + $0x1a0] sm:$0xff]  ;;  %v918_v55 = vld [vmem:[%s1229_s1 + $0x158] sm:$0xff] }
  0x1b   :  { %521 = vmatpush.bf16.msra.mxu1 %v884_v24  ;;  %v926_v56 = vld [vmem:[%s1229_s1 + $0x198] sm:$0xff]  ;;  %v909_v57 = vld [vmem:[%s1229_s1 + $0x110] sm:$0xff]  ;;  %v908_v60 = vld [vmem:[%s1229_s1 + $0x108] sm:$0xff] }
  0x1c   :  { %534 = vmatpush.bf16.msra.mxu2 %v892_v26  ;;  %v917_v58 = vld [vmem:[%s1229_s1 + $0x150] sm:$0xff]  ;;  %v916_v62 = vld [vmem:[%s1229_s1 + $0x148] sm:$0xff]  ;;  %v24_v0 = vld [vmem:[%s1228_s0 + $0x18] sm:$0xf] }
  0x1d   :  { %547 = vmatpush.bf16.msra.mxu3 %v900_v39  ;;  %v925_v59 = vld [vmem:[%s1229_s1 + $0x190] sm:$0xff]  ;;  %v924_v63 = vld [vmem:[%s1229_s1 + $0x188] sm:$0xff]  ;;  %v907_v2 = vld [vmem:[%s1229_s1 + $0x100] sm:$0xff]  ;;  %v151_v4 = vunpack.c.l.b16 %v24_v0 }
  0x1e   :  { %509 = vmatpush.bf16.msra.mxu0 %v875_v30  ;;  %v23_v61 = vld [vmem:[%s1228_s0 + $0x10] sm:$0xff]  ;;  %v915_v5 = vld [vmem:[%s1229_s1 + $0x140] sm:$0xff]  ;;  %v609_v10 = vld [vmem:[%s1231_s3 + $0x78] sm:$0xff] }
  0x1f   :  { %522 = vmatpush.bf16.msra.mxu1 %v883_v31  ;;  %v149_v1 = vunpack.c.l.b16 %v23_v61  ;;  %v150_v3 = vunpack.c.h.b16 %v23_v61  ;;  %v923_v6 = vld [vmem:[%s1229_s1 + $0x180] sm:$0xff]  ;;  %v158_v9 = vpack.c.b16 %v151_v4, %v151_v4  ;;  %v608_v11 = vld [vmem:[%s1231_s3 + $0x70] sm:$0xff]  ;;  %v607_v12 = vld [vmem:[%s1231_s3 + $0x68] sm:$0xff] }
  0x20   :  { %535 = vmatpush.bf16.msra.mxu2 %v891_v34  ;;  %v606_v13 = vld [vmem:[%s1231_s3 + $0x60] sm:$0xff]  ;;  %v605_v14 = vld [vmem:[%s1231_s3 + $0x58] sm:$0xff]  ;;  %v604_v15 = vld [vmem:[%s1231_s3 + $0x50] sm:$0xff] }
  0x21   :  { %510 = vmatmul.bf16.vlgmr.msra.gmra.mxu0 %v152_v38  ;;  %548 = vmatpush.bf16.msra.mxu3 %v899_v45  ;;  %v156_v7 = vpack.c.b16 %v149_v1, %v149_v1  ;;  %v157_v8 = vpack.c.b16 %v150_v3, %v150_v3  ;;  %v603_v16 = vld [vmem:[%s1231_s3 + $0x48] sm:$0xff]  ;;  %v602_v17 = vld [vmem:[%s1231_s3 + $0x40] sm:$0xff]  ;;  %v601_v18 = vld [vmem:[%s1231_s3 + $0x38] sm:$0xff] }
  0x22   :  { %554 = vmatpush.bf16.msrb.mxu0 %v914_v35  ;;  %523 = vmatmul.bf16.vlgmr.msra.gmra.mxu1 %v153_v41  ;;  %v600_v19 = vld [vmem:[%s1231_s3 + $0x30] sm:$0xff]  ;;  %v599_v20 = vld [vmem:[%s1231_s3 + $0x28] sm:$0xff]  ;;  %v598_v21 = vld [vmem:[%s1231_s3 + $0x20] sm:$0xff] }
  0x23   :  { %567 = vmatpush.bf16.msrb.mxu1 %v922_v36  ;;  %536 = vmatmul.bf16.vlgmr.msra.gmra.mxu2 %v154_v40  ;;  %v597_v23 = vld [vmem:[%s1231_s3 + $0x18] sm:$0xff]  ;;  %v596_v25 = vld [vmem:[%s1231_s3 + $0x10] sm:$0xff]  ;;  %v595_v26 = vld [vmem:[%s1231_s3 + $0x8] sm:$0xff] }
  0x24   :  { %580 = vmatpush.bf16.msrb.mxu2 %v930_v37  ;;  %549 = vmatmul.bf16.vlgmr.msra.gmra.mxu3 %v155_v50  ;;  %v594_v28 = vld [vmem:[%s1231_s3] sm:$0xff] }
  0x25   :  { %614 = vmatpush.msrb.mxu3 %v609_v10  ;;  %v932_v31 = vld [vmem:[%s1230_s2] ss:$0 sm:$0xff] }
  0x26   :  { %555 = vmatpush.bf16.msrb.mxu0 %v913_v42 }
  0x27   :  { %568 = vmatpush.bf16.msrb.mxu1 %v921_v43  ;;  %615 = vmatpush.msrb.mxu3 %v608_v11 }
  0x28   :  { %581 = vmatpush.bf16.msrb.mxu2 %v929_v44 }
  0x29   :  { %616 = vmatpush.msrb.mxu3 %v607_v12 }
  0x2a   :  { %556 = vmatpush.bf16.msrb.mxu0 %v912_v47 }
  0x2b   :  { %569 = vmatpush.bf16.msrb.mxu1 %v920_v48  ;;  %617 = vmatpush.msrb.mxu3 %v606_v13 }
  0x2c   :  { %582 = vmatpush.bf16.msrb.mxu2 %v928_v49  ;;  %v933_v49 = vld [vmem:[%s1232_s4] ss:$0 sm:$0xff] }
  0x2d   :  { %618 = vmatpush.msrb.mxu3 %v605_v14 }
  0x2e   :  { %557 = vmatpush.bf16.msrb.mxu0 %v911_v51 }
  0x2f   :  { %570 = vmatpush.bf16.msrb.mxu1 %v919_v52  ;;  %619 = vmatpush.msrb.mxu3 %v604_v15 }
  0x30   :  { %583 = vmatpush.bf16.msrb.mxu2 %v927_v53 }
  0x31   :  { %620 = vmatpush.msrb.mxu3 %v603_v16 }
  0x32   :  { %558 = vmatpush.bf16.msrb.mxu0 %v910_v54 }
  0x33   :  { %571 = vmatpush.bf16.msrb.mxu1 %v918_v55  ;;  %621 = vmatpush.msrb.mxu3 %v602_v17 }
  0x34   :  { %584 = vmatpush.bf16.msrb.mxu2 %v926_v56 }
  0x35   :  { %622 = vmatpush.msrb.mxu3 %v601_v18 }
  0x36   :  { %559 = vmatpush.bf16.msrb.mxu0 %v909_v57 }
  0x37   :  { %572 = vmatpush.bf16.msrb.mxu1 %v917_v58  ;;  %623 = vmatpush.msrb.mxu3 %v600_v19 }
  0x38   :  { %585 = vmatpush.bf16.msrb.mxu2 %v925_v59 }
  0x39   :  { %624 = vmatpush.msrb.mxu3 %v599_v20 }
  0x3a   :  { %560 = vmatpush.bf16.msrb.mxu0 %v908_v60 }
  0x3b   :  { %573 = vmatpush.bf16.msrb.mxu1 %v916_v62  ;;  %625 = vmatpush.msrb.mxu3 %v598_v21 }
  0x3c   :  { %586 = vmatpush.bf16.msrb.mxu2 %v924_v63 }
  0x3d   :  { %626 = vmatpush.msrb.mxu3 %v597_v23 }
  0x3e   :  { %561 = vmatpush.bf16.msrb.mxu0 %v907_v2 }
  0x3f   :  { %574 = vmatpush.bf16.msrb.mxu1 %v915_v5  ;;  %627 = vmatpush.msrb.mxu3 %v596_v25 }
  0x40   :  { %587 = vmatpush.bf16.msrb.mxu2 %v923_v6 }
  0x41   :  { %562 = vmatmul.bf16.vlgmr.msrb.gmra.mxu0 %v156_v7  ;;  %628 = vmatpush.msrb.mxu3 %v595_v26 }
  0x42   :  { %575 = vmatmul.bf16.vlgmr.msrb.gmra.mxu1 %v157_v8 }
  0x43   :  { %588 = vmatmul.bf16.vlgmr.msrb.gmra.mxu2 %v158_v9  ;;  %629 = vmatpush.msrb.mxu3 %v594_v28 }
  0x9e   :  { %v511_v22 = vpop.f32.mrf.mxu0 }
  0x9f   :  { %v524_v24 = vpop.f32.mrf.mxu1  ;;  %v512_v34 = vadd.f32 %v932_v31, %v511_v22 }
  0xa1   :  { %v525_v35 = vadd.f32 %v524_v24, %v512_v34 }
  0xa6   :  { %v537_v27 = vpop.f32.mrf.mxu2  ;;  %v513_v29 = vpop.f32.mrf.mxu0 }
  0xa7   :  { %v526_v30 = vpop.f32.mrf.mxu1  ;;  %v550_v32 = vpop.f32.mrf.mxu3  ;;  %v538_v37 = vadd.f32 %v537_v27, %v525_v35 }
  0xa9   :  { %v551_v38 = vadd.f32 %v550_v32, %v538_v37 }
  0xae   :  { %v539_v33 = vpop.f32.mrf.mxu2 }
  0xaf   :  { %v552_v36 = vpop.f32.mrf.mxu3 }
  0xbe   :  { %v563_v39 = vpop.f32.mrf.mxu0 }
  0xbf   :  { %v576_v40 = vpop.f32.mrf.mxu1  ;;  %v564_v41 = vadd.f32 %v563_v39, %v551_v38 }
  0xc1   :  { %v577_v42 = vadd.f32 %v576_v40, %v564_v41 }
  0xc6   :  { %v589_v43 = vpop.f32.mrf.mxu2  ;;  %v565_v45 = vpop.f32.mrf.mxu0 }
  0xc7   :  { %v590_v44 = vadd.f32 %v589_v43, %v577_v42  ;;  %v578_v46 = vpop.f32.mrf.mxu1 }
  0xc9   :  { %v593_v47 = vmax.f32 %v590_v44, 0.0 }
  0xcb   :  { %630 = vmatmul.f32.vlgmr.msrb.gmra.mxu3 %v593_v47 }
  0xce   :  { %v591_v48 = vpop.f32.mrf.mxu2 }
 0x14e   :  { %v631_v50 = vpop.f32.mrf.mxu3 }
 0x14f   :  { %v632_v51 = vadd.f32 %v933_v49, %v631_v50 }
 0x151   :  { %634 = vst [vmem:[#allocation2] sm:$0xff] %v632_v51 }
 0x152   :  { %645 = dma.vmem_to_hbm [thread:$0]  %s641_s19, 128, %s643_s22, [#allocation3]  }
 0x153   :  { %958 = dma.done.wait [#allocation3], 128  }
 0x154   :  { %959 = vsyncadd [#allocation3], 4294967168 }
 0x155   :  { %650 = vsyncpa [#allocation3], 1 }

</bundles_post_ra>
